<compile_context>
chip_gen: v7x
topology: tpu7x:2x2x1
jax: 0.10.0
libtpu: 0.0.40
codegen_flags: <defaults>
</compile_context>

<pallas_src>
import jax
import jax.numpy as jnp
from jax import lax
from jax.experimental import pallas as pl
from jax.experimental.pallas import tpu as pltpu

_SMALL_COPY_BYTES = 1 << 20  # below ~1 MiB an XLA copy beats any kernel launch


def _dma_copy_kernel(x_ref, o_ref, sem):
    # Whole-array HBM->HBM DMA: zero compute, no VMEM staging, no alignment
    # padding, no per-step pipeline overhead.
    cp = pltpu.make_async_copy(x_ref, o_ref, sem)
    cp.start()
    cp.wait()


def _identity_copy_pallas_raw(obs: jax.Array) -> jax.Array:
    return pl.pallas_call(
        _dma_copy_kernel,
        out_shape=jax.ShapeDtypeStruct(obs.shape, obs.dtype),
        in_specs=[pl.BlockSpec(memory_space=pl.ANY)],
        out_specs=pl.BlockSpec(memory_space=pl.ANY),
        scratch_shapes=[pltpu.SemaphoreType.DMA(())],
    )(obs)


# pallas_call has no automatic VJP; give the copy an identity gradient so it is
# safe if it ever lands on the training path.
@jax.custom_vjp
def _pallas_copy(obs):
    return _identity_copy_pallas_raw(obs)


def _pallas_copy_fwd(obs):
    return _identity_copy_pallas_raw(obs), None


def _pallas_copy_bwd(_, g):
    return (g,)


_pallas_copy.defvjp(_pallas_copy_fwd, _pallas_copy_bwd)


def identity_copy_pallas(obs: jax.Array, *, force_kernel: bool = False) -> jax.Array:
    """Materialized identity copy of `obs` via an HBM->HBM DMA Pallas kernel.

    For tiny inputs (the actual SAC use case: batch=2, feat=32 -> 256 bytes)
    the kernel launch is 100% overhead, so we fall back to a plain XLA copy
    unless force_kernel=True.
    """
    nbytes = obs.size * jnp.dtype(obs.dtype).itemsize
    if not force_kernel and nbytes < _SMALL_COPY_BYTES:
        return jnp.copy(obs)
    return _pallas_copy(obs)


def identity_encoder_forward(obs: jax.Array, detach: bool = False) -> jax.Array:
    """Forward pass of IdentityEncoder: pure identity, no kernel launched."""
    if detach:
        return lax.stop_gradient(obs)
    return obs


class IdentityEncoder:
    """JAX/Pallas counterpart of the PyTorch IdentityEncoder."""

    def __init__(self, obs_shape, feature_dim, num_layers, num_filters):
        assert len(obs_shape) == 1
        # Matches PyTorch: feature_dim attribute is obs_shape[0]; the other
        # constructor args are ignored.  No parameters.
        self.feature_dim = obs_shape[0]

    def __call__(self, obs, detach=False):
        return identity_encoder_forward(obs, detach=detach)

    def copy_conv_weights_from(self, source):
        pass  # no conv weights

    def log(self, L, step, log_freq):
        pass  # no-op


if __name__ == "__main__":
    key = jax.random.PRNGKey(0)
    batch, feature_dim = 2, 32
    obs = jax.random.normal(key, (batch, feature_dim), dtype=jnp.float32)

    enc = IdentityEncoder(obs_shape=(feature_dim,), feature_dim=50,
                          num_layers=4, num_filters=32)

    # Value path (no kernel, zero cost).
    out = jax.block_until_ready(enc(obs))
    assert out.shape == obs.shape
    assert out.dtype == obs.dtype
    assert bool(jnp.all(out == obs))

    # Detach path: same values, gradients stopped.
    out_det = jax.block_until_ready(enc(obs, detach=True))
    assert bool(jnp.all(out_det == obs))

    # Explicit Pallas HBM->HBM DMA copy kernel -- force it even on this tiny
    # input so the kernel is actually compiled and run once.
    out_copy = jax.block_until_ready(identity_copy_pallas(obs, force_kernel=True))
    assert out_copy.shape == obs.shape
    assert out_copy.dtype == obs.dtype
    assert bool(jnp.all(out_copy == obs))

    # Gradient through the Pallas copy (custom_vjp identity gradient).
    g = jax.block_until_ready(
        jax.grad(lambda x: jnp.sum(identity_copy_pallas(x, force_kernel=True)))(obs))
    assert bool(jnp.all(g == jnp.ones_like(obs)))

    # Small-input fallback path (no kernel).
    out_fallback = jax.block_until_ready(identity_copy_pallas(obs))
    assert bool(jnp.all(out_fallback == obs))

    print("KERNEL_OK")
</pallas_src>

<mosaic_0001>
module attributes {stable_mosaic.version = 11 : i64} {
  func.func @_dma_copy_kernel(%arg0: memref<2x32xf32, #tpu.memory_space<any>>, %arg1: memref<2x32xf32, #tpu.memory_space<any>>, %arg2: memref<!tpu.dma_semaphore, #tpu.memory_space<semaphore_mem>>) attributes {dimension_semantics = [], scalar_prefetch = 0 : i64, scratch_operands = 1 : i64, tpu.core_type = #tpu.core_type<tc>} {
    tpu.enqueue_dma source(%arg0 : memref<2x32xf32, #tpu.memory_space<any>>) target(%arg1 : memref<2x32xf32, #tpu.memory_space<any>>) target_semaphore(%arg2 : memref<!tpu.dma_semaphore, #tpu.memory_space<semaphore_mem>>)
    tpu.wait_dma2 semaphore(%arg2 : memref<!tpu.dma_semaphore, #tpu.memory_space<semaphore_mem>>) src(%arg0 : memref<2x32xf32, #tpu.memory_space<any>>) dst(%arg1 : memref<2x32xf32, #tpu.memory_space<any>>)
    return
  }
}

</mosaic_0001>

<bundles_post_ra>
// kernel: tpu_custom_call.1
= control target key start
LH: loop header
LB: loop body
LE: loop exit
PB: predicated region body
PF: predicated region fallthrough
CT: control target
= control target key end

     0   :  { %s34_s6 = smov [#allocation2]   ;;  %s35_s7 = smov [#allocation3]   ;;  %s53_s0 = inlined_call_operand.hbm [shape: f32[2,32], index: 0, kind: input, shape index: {}]   ;;  %s54_s1 = inlined_call_operand.hbm [shape: f32[2,32], index: 1, kind: output, shape index: {}]  }
   0x1   :  { %s36_s8 = smov 0  }
   0x2   :  { %18 = dma.general %s53_s0, 32, %s54_s1, %s34_s6, %s35_s7, [#allocation4], %s36_s8, 0  }
   0x3   :  { %32 = dma.done.wait [#allocation2], 32 }
   0x4   :  { %33 = vsyncadd [#allocation2], 4294967264 }
   0x5   :  { %22 = vsyncmov [#allocation2] }
   0x8   :  { %s23_s13 = vpop.sfrf %22 }
   0x9   :  { %p28_p0 = scmp.ne.s32.totalorder %s23_s13, 0 }
   0xb   :  { %27 = shalt.err (%p28_p0)  }

</bundles_post_ra>
